<compile_context>
chip_gen: v7x
topology: tpu7x:2x2x1
jax: 0.10.0
libtpu: 0.0.40
codegen_flags: <defaults>
</compile_context>

<pallas_src>
import functools

import jax
import jax.numpy as jnp
import numpy as np
from jax.experimental import pallas as pl
from jax.experimental.pallas import tpu as pltpu

BN_EPS = 1e-5


def _round_up(x, m):
    return (x + m - 1) // m * m


def _vmem_capacity_bytes():
    """Generation-aware VMEM capacity (64 MiB/TC on v7x, 128 MiB on v5e/v6e)."""
    try:
        return int(pltpu.get_tpu_info().vmem_capacity_bytes)
    except Exception:           # query unavailable -> assume the small (v7x-class) part
        return 64 * 1024 * 1024


def _budgets():
    cap = _vmem_capacity_bytes()
    if cap <= 80 * (1 << 20):       # v7x-class 64 MiB/TC: leave real headroom
        return 20 << 20, 36 << 20   # (tile budget, vmem_limit_bytes clamp)
    return 44 << 20, 64 << 20       # v5e / v6e 128 MiB parts: bigger tiles


def _choose_row_tile(N, H, W, Cin, ncols, out_bytes, budget):
    """Input image rows per grid step (each produces 2 output rows)."""
    in_row = W * (2 * Cin) * 2             # bf16 column-paired input bytes per image row
    out_row = W * ncols * out_bytes        # pass-2 output bytes per image row
    w_bytes = 2 * (2 * Cin) * ncols * 2    # resident packed weight (both row taps)
    fixed = 2 * w_bytes + 2 * in_row + (1 << 20)   # buffered weight + halo row + slack
    per_row = 2 * (in_row + out_row)               # double-buffered streamed blocks
    tr = int(max(1, (budget - fixed) // per_row))
    tr = min(tr, H)
    # Keep >= 4 grid steps so both v7x TensorCores get >= 2 pipelined steps each.
    min_chunks = -(-4 // max(N, 1))
    if min_chunks > 1 and H >= min_chunks:
        tr = min(tr, H // min_chunks)
    return max(1, tr)


# -----------------------------------------------------------------------------------
# Pass 1: sub-pixel transposed-conv GEMM (recomputed, never stored) + BN partial sums.
# -----------------------------------------------------------------------------------
def _stats_kernel(x_ref, w_ref, stats_ref, *, rows, halo):
    # x_ref: (1, (TR+1)*W, 2*Cin) bf16 column-paired rows (last row is the halo row);
    # w_ref: (2, 2*Cin, 4*Cp) bf16 packed per-row-tap weights.
    top = x_ref[0, 0:rows, :]             # input row m   : taps (m, n) | (m, n+1)
    bot = x_ref[0, halo:halo + rows, :]   # input row m+1 : taps (m+1, n) | (m+1, n+1)
    y = jnp.dot(top, w_ref[0], preferred_element_type=jnp.float32)
    y = y + jnp.dot(bot, w_ref[1], preferred_element_type=jnp.float32)
    # Per-tile BatchNorm partials; the GLOBAL reduction is finished in the wrapper so the
    # grid axis stays "parallel".  Direct sublane stores (rows 2..7 left unread/unused).
    stats_ref[0, 0:1, :] = jnp.sum(y, axis=0, keepdims=True)
    stats_ref[0, 1:2, :] = jnp.sum(y * y, axis=0, keepdims=True)


# -----------------------------------------------------------------------------------
# Pass 2: recompute the GEMM and fuse folded BatchNorm affine + ReLU into the store.
# -----------------------------------------------------------------------------------
def _gemm_bn_relu_kernel(x_ref, w_ref, scale_ref, shift_ref, o_ref, *, rows, halo):
    top = x_ref[0, 0:rows, :]
    bot = x_ref[0, halo:halo + rows, :]
    y = jnp.dot(top, w_ref[0], preferred_element_type=jnp.float32)
    y = y + jnp.dot(bot, w_ref[1], preferred_element_type=jnp.float32)
    o_ref[0] = jnp.maximum(y * scale_ref[...] + shift_ref[...], 0.0).astype(o_ref.dtype)


def upconv_block(x_nchw, w_t, gamma, beta, *, row_tile=None, out_dtype=jnp.float32):
    """x_nchw: (N, Cin, H, W); w_t: ConvTranspose2d weight (Cin, Cout, 3, 3);
    gamma/beta: (Cout,).  Returns (N, Cout, 2H, 2W) in `out_dtype` (float32 default;
    pass jnp.bfloat16 if the consumer accepts it -- halves pass-2 / epilogue traffic)."""
    N, Cin, H, W = x_nchw.shape
    Cout = w_t.shape[1]
    Hout, Wout = 2 * H, 2 * W
    Cp = _round_up(Cout, 32)      # minimal padding for 128-lane stores (no extra MXU pad)
    ncols = 4 * Cp                # [phase00 | phase01 | phase10 | phase11] columns
    K2 = 2 * Cin                  # per-row-tap contraction depth (column pair)
    out_bytes = jnp.dtype(out_dtype).itemsize

    tile_budget, limit_cap = _budgets()
    if row_tile is None:
        row_tile = _choose_row_tile(N, H, W, Cin, ncols, out_bytes, tile_budget)
    TR = int(max(1, min(row_tile, H)))
    H_pad = _round_up(H, TR)
    n_chunks = H_pad // TR
    G = N * n_chunks              # flattened, fully "parallel" grid
    rows = TR * W                 # GEMM rows per grid step

    # ---- glue (one fused XLA producer): NCHW -> NHWC bf16, one zero row/col pad on the
    # bottom/right (covers the m+1 / n+1 taps at the border and output_padding=1), pair
    # columns n | n+1, chunk rows with a 1-row halo so each grid step is self-contained.
    x = jnp.transpose(x_nchw, (0, 2, 3, 1)).astype(jnp.bfloat16)
    xp = jnp.pad(x, ((0, 0), (0, 1 + H_pad - H), (0, 1), (0, 0)))      # (N, H_pad+1, W+1, Cin)
    xc = jnp.concatenate([xp[:, :, :W, :], xp[:, :, 1:, :]], axis=-1)  # (N, H_pad+1, W, 2Cin)
    body = xc[:, :H_pad].reshape(N, n_chunks, TR, W, K2)
    halo = xc[:, TR::TR][:, :, None]                                   # (N, n_chunks, 1, W, K2)
    xq = jnp.concatenate([body, halo], axis=2).reshape(G, (TR + 1) * W, K2)

    # ---- packed per-row-tap weight (2, 2*Cin, ncols): row tap 0 = input row m, tap 1 =
    # row m+1; within a tap, rows [0:Cin] multiply column n, [Cin:2Cin] column n+1.
    # Output column group p = 2*ry + rx is the (ry, rx) sub-pixel phase.  Only 9 of 16
    # (tap, phase) Cin x Cout blocks are nonzero for ConvTranspose2d(k=3, s=2, p=1, op=1).
    w32 = w_t.astype(jnp.float32)
    tap_map = {
        (0, 0): ((0, 1, 1), (1, 1, 2), (2, 2, 1), (3, 2, 2)),
        (0, 1): ((1, 1, 0), (3, 2, 0)),
        (1, 0): ((2, 0, 1), (3, 0, 2)),
        (1, 1): ((3, 0, 0),),
    }
    wrow = jnp.zeros((2, K2, ncols), jnp.float32)
    for (rt, ct), entries in tap_map.items():
        for p, ky, kx in entries:
            wrow = wrow.at[rt, ct * Cin:(ct + 1) * Cin,
                           p * Cp:p * Cp + Cout].set(w32[:, :, ky, kx])
    wrow = wrow.astype(jnp.bfloat16)

    in_blk = (TR + 1) * W * K2 * 2
    w_blk = 2 * K2 * ncols * 2
    vmem1 = 2 * (in_blk + w_blk + 8 * ncols * 4) + (4 << 20)
    params1 = pltpu.CompilerParams(
        dimension_semantics=("parallel",),
        vmem_limit_bytes=int(min(max(vmem1, 16 << 20), limit_cap)))
    stats = pl.pallas_call(
        functools.partial(_stats_kernel, rows=rows, halo=W),
        grid=(G,),
        in_specs=[
            pl.BlockSpec((1, (TR + 1) * W, K2), lambda i: (i, 0, 0)),
            pl.BlockSpec((2, K2, ncols), lambda i: (0, 0, 0)),
        ],
        out_specs=pl.BlockSpec((1, 8, ncols), lambda i: (i, 0, 0)),
        out_shape=jax.ShapeDtypeStruct((G, 8, ncols), jnp.float32),
        compiler_params=params1,
    )(xq, wrow)

    # ---- finish the GLOBAL BatchNorm reduction, fold into per-channel scale/shift.
    # NOTE: E[y^2]-E[y]^2 in f32 is fine for conv activations; use a shifted / Welford
    # accumulation instead if |mean| >> std in your data.
    count = float(N * Hout * Wout)                     # true element count (pads excluded)
    sum_cols = jnp.sum(stats[:, 0, :], axis=0)
    sumsq_cols = jnp.sum(stats[:, 1, :], axis=0)
    sum_c = jnp.sum(sum_cols.reshape(4, Cp), axis=0)   # fold the 4 phases per channel
    sumsq_c = jnp.sum(sumsq_cols.reshape(4, Cp), axis=0)
    mean_c = sum_c / count
    var_c = jnp.maximum(sumsq_c / count - mean_c * mean_c, 0.0)   # biased (training) var
    inv_std = jax.lax.rsqrt(var_c + BN_EPS)
    gamma_p = jnp.zeros((Cp,), jnp.float32).at[:Cout].set(gamma.astype(jnp.float32))
    beta_p = jnp.zeros((Cp,), jnp.float32).at[:Cout].set(beta.astype(jnp.float32))
    scale_c = gamma_p * inv_std
    shift_c = beta_p - mean_c * scale_c
    scale_cols = jnp.tile(scale_c, 4).reshape(1, ncols)
    shift_cols = jnp.tile(shift_c, 4).reshape(1, ncols)

    vmem2 = 2 * (in_blk + w_blk + rows * ncols * out_bytes + 2 * ncols * 4) + (4 << 20)
    params2 = pltpu.CompilerParams(
        dimension_semantics=("parallel",),
        vmem_limit_bytes=int(min(max(vmem2, 16 << 20), limit_cap)))
    o = pl.pallas_call(
        functools.partial(_gemm_bn_relu_kernel, rows=rows, halo=W),
        grid=(G,),
        in_specs=[
            pl.BlockSpec((1, (TR + 1) * W, K2), lambda i: (i, 0, 0)),
            pl.BlockSpec((2, K2, ncols), lambda i: (0, 0, 0)),
            pl.BlockSpec((1, ncols), lambda i: (0, 0)),
            pl.BlockSpec((1, ncols), lambda i: (0, 0)),
        ],
        out_specs=pl.BlockSpec((1, rows, ncols), lambda i: (i, 0, 0)),
        out_shape=jax.ShapeDtypeStruct((G, rows, ncols), out_dtype),
        compiler_params=params2,
    )(xq, wrow, scale_cols, shift_cols)

    # ---- single fused XLA epilogue pass: un-interleave the 4 sub-pixel phases, drop the
    # padded rows/channels and return NCHW (module semantics).  Keep NHWC / drop this
    # transpose when chaining with other NHWC blocks.
    o6 = o.reshape(N, H_pad, W, 2, 2, Cp)[:, :H, :, :, :, :Cout]
    out = jnp.transpose(o6, (0, 5, 1, 3, 2, 4)).reshape(N, Cout, Hout, Wout)
    return out.astype(out_dtype)


def _reference_numpy(x, w_t, gamma, beta):
    """Independent NumPy reference: direct scatter definition of
    ConvTranspose2d(k=3, s=2, p=1, op=1) followed by training-mode BN + ReLU."""
    x = np.asarray(x, np.float64)
    w_t = np.asarray(w_t, np.float64)
    gamma = np.asarray(gamma, np.float64)
    beta = np.asarray(beta, np.float64)
    N, Cin, H, W = x.shape
    Cout = w_t.shape[1]
    Hout, Wout = 2 * H, 2 * W
    conv = np.zeros((N, Cout, Hout, Wout), np.float64)
    for ky in range(3):
        for kx in range(3):
            contrib = np.einsum("nihw,io->nohw", x, w_t[:, :, ky, kx])
            iy0 = 1 if ky == 0 else 0
            ix0 = 1 if kx == 0 else 0
            oy0 = 2 * iy0 - 1 + ky
            ox0 = 2 * ix0 - 1 + kx
            conv[:, :, oy0:oy0 + 2 * (H - iy0):2,
                 ox0:ox0 + 2 * (W - ix0):2] += contrib[:, :, iy0:, ix0:]
    mean = conv.mean(axis=(0, 2, 3), keepdims=True)
    var = conv.var(axis=(0, 2, 3), keepdims=True)   # biased
    norm = (conv - mean) / np.sqrt(var + BN_EPS)
    out = norm * gamma.reshape(1, Cout, 1, 1) + beta.reshape(1, Cout, 1, 1)
    return np.maximum(out, 0.0)


if __name__ == "__main__":
    N, Cin, Cout, H, W = 2, 4, 8, 16, 16

    key = jax.random.PRNGKey(0)
    kx_, kw_, kg_, kb_ = jax.random.split(key, 4)
    # x / w rounded to bf16-representable values so the f64 NumPy reference matches the
    # bf16-fed MXU path up to f32 accumulation order.
    x = jax.random.normal(kx_, (N, Cin, H, W), jnp.float32)
    x = x.astype(jnp.bfloat16).astype(jnp.float32)
    w_t = (0.1 * jax.random.normal(kw_, (Cin, Cout, 3, 3), jnp.float32))
    w_t = w_t.astype(jnp.bfloat16).astype(jnp.float32)
    gamma = 1.0 + 0.1 * jax.random.normal(kg_, (Cout,), jnp.float32)
    beta = 0.1 * jax.random.normal(kb_, (Cout,), jnp.float32)

    ref = _reference_numpy(x, w_t, gamma, beta)

    # Auto row tile (TR=8 here -> grid of 4 steps, 2 per v7x TensorCore).
    fn = jax.jit(upconv_block)
    out = jax.block_until_ready(fn(x, w_t, gamma, beta))
    assert out.shape == (N, Cout, 2 * H, 2 * W)
    np.testing.assert_allclose(np.asarray(out), ref, rtol=5e-3, atol=5e-3)

    # Explicit row tile that does not divide H (exercises the zero-padded tail chunk).
    fn5 = jax.jit(functools.partial(upconv_block, row_tile=5))
    out5 = jax.block_until_ready(fn5(x, w_t, gamma, beta))
    np.testing.assert_allclose(np.asarray(out5), ref, rtol=5e-3, atol=5e-3)

    print("KERNEL_OK")
</pallas_src>

<mosaic_0001>
module attributes {stable_mosaic.version = 11 : i64} {
  func.func @_stats_kernel(%arg0: i32, %arg1: memref<1x144x8xbf16, #tpu.memory_space<vmem>>, %arg2: memref<2x8x128xbf16, #tpu.memory_space<vmem>>, %arg3: memref<1x8x128xf32, #tpu.memory_space<vmem>>) attributes {dimension_semantics = [#tpu.dimension_semantics<parallel>], iteration_bounds = array<i64: 4>, scalar_prefetch = 0 : i64, scratch_operands = 0 : i64, tpu.core_type = #tpu.core_type<tc>, window_params = [{transform_indices = @transform_0, window_bounds = array<i64: 1, 144, 8>}, {pipeline_mode = #tpu.pipeline_mode<synchronous>, transform_indices = @transform_1, window_bounds = array<i64: 2, 8, 128>}, {transform_indices = @transform_2, window_bounds = array<i64: 1, 8, 128>}]} {
    %c0 = arith.constant 0 : index
    %c0_0 = arith.constant 0 : index
    %c0_1 = arith.constant 0 : index
    %0 = vector.load %arg1[%c0, %c0_0, %c0_1] : memref<1x144x8xbf16, #tpu.memory_space<vmem>>, vector<1x128x8xbf16>
    %1 = vector.shape_cast %0 : vector<1x128x8xbf16> to vector<128x8xbf16>
    %c0_2 = arith.constant 0 : index
    %c16 = arith.constant 16 : index
    %c0_3 = arith.constant 0 : index
    %2 = vector.load %arg1[%c0_2, %c16, %c0_3] : memref<1x144x8xbf16, #tpu.memory_space<vmem>>, vector<1x128x8xbf16>
    %3 = vector.shape_cast %2 : vector<1x128x8xbf16> to vector<128x8xbf16>
    %c0_4 = arith.constant 0 : index
    %c0_5 = arith.constant 0 : index
    %c0_6 = arith.constant 0 : index
    %4 = vector.load %arg2[%c0_4, %c0_5, %c0_6] : memref<2x8x128xbf16, #tpu.memory_space<vmem>>, vector<1x8x128xbf16>
    %5 = vector.shape_cast %4 : vector<1x8x128xbf16> to vector<8x128xbf16>
    %cst = arith.constant dense<0.000000e+00> : vector<128x128xf32>
    %6 = tpu.matmul %1, %5, %cst {dimension_numbers = #tpu.dot_dimension_numbers<[1], [0], [0], [1], [0, 0, 1, 1], [], []>} : vector<128x8xbf16>, vector<8x128xbf16>, vector<128x128xf32> -> vector<128x128xf32>
    %c1 = arith.constant 1 : index
    %c0_7 = arith.constant 0 : index
    %c0_8 = arith.constant 0 : index
    %7 = vector.load %arg2[%c1, %c0_7, %c0_8] : memref<2x8x128xbf16, #tpu.memory_space<vmem>>, vector<1x8x128xbf16>
    %8 = vector.shape_cast %7 : vector<1x8x128xbf16> to vector<8x128xbf16>
    %cst_9 = arith.constant dense<0.000000e+00> : vector<128x128xf32>
    %9 = tpu.matmul %3, %8, %cst_9 {dimension_numbers = #tpu.dot_dimension_numbers<[1], [0], [0], [1], [0, 0, 1, 1], [], []>} : vector<128x8xbf16>, vector<8x128xbf16>, vector<128x128xf32> -> vector<128x128xf32>
    %10 = arith.addf %6, %9 : vector<128x128xf32>
    %cst_10 = arith.constant dense<0.000000e+00> : vector<128xf32>
    %11 = vector.multi_reduction <add>, %10, %cst_10 [0] : vector<128x128xf32> to vector<128xf32>
    %12 = vector.shape_cast %11 : vector<128xf32> to vector<1x128xf32>
    %c0_11 = arith.constant 0 : index
    %c0_12 = arith.constant 0 : index
    %c0_13 = arith.constant 0 : index
    %13 = vector.load %arg3[%c0_11, %c0_12, %c0_13] : memref<1x8x128xf32, #tpu.memory_space<vmem>>, vector<1x1x128xf32>
    %14 = vector.shape_cast %13 : vector<1x1x128xf32> to vector<1x128xf32>
    %15 = vector.shape_cast %12 : vector<1x128xf32> to vector<1x1x128xf32>
    tpu.vector_store %arg3[%c0_11, %c0_12, %c0_13], %15 {strides = array<i32>} : memref<1x8x128xf32, #tpu.memory_space<vmem>>, vector<1x1x128xf32>,
    %16 = arith.mulf %10, %10 : vector<128x128xf32>
    %cst_14 = arith.constant dense<0.000000e+00> : vector<128xf32>
    %17 = vector.multi_reduction <add>, %16, %cst_14 [0] : vector<128x128xf32> to vector<128xf32>
    %18 = vector.shape_cast %17 : vector<128xf32> to vector<1x128xf32>
    %c0_15 = arith.constant 0 : index
    %c1_16 = arith.constant 1 : index
    %c0_17 = arith.constant 0 : index
    %19 = vector.load %arg3[%c0_15, %c1_16, %c0_17] : memref<1x8x128xf32, #tpu.memory_space<vmem>>, vector<1x1x128xf32>
    %20 = vector.shape_cast %19 : vector<1x1x128xf32> to vector<1x128xf32>
    %21 = vector.shape_cast %18 : vector<1x128xf32> to vector<1x1x128xf32>
    tpu.vector_store %arg3[%c0_15, %c1_16, %c0_17], %21 {strides = array<i32>} : memref<1x8x128xf32, #tpu.memory_space<vmem>>, vector<1x1x128xf32>,
    return
  }
  func.func @transform_0(%arg0: i32) -> (i32, i32, i32) {
    %c0_i32 = arith.constant 0 : i32
    %c0_i32_0 = arith.constant 0 : i32
    %c0_i32_1 = arith.constant 0 : i32
    return %arg0, %c0_i32, %c0_i32_0 : i32, i32, i32
  }
  func.func @transform_1(%arg0: i32) -> (i32, i32, i32) {
    %c0_i32 = arith.constant 0 : i32
    %c0_i32_0 = arith.constant 0 : i32
    %c0_i32_1 = arith.constant 0 : i32
    %c0_i32_2 = arith.constant 0 : i32
    return %c0_i32, %c0_i32_0, %c0_i32_1 : i32, i32, i32
  }
  func.func @transform_2(%arg0: i32) -> (i32, i32, i32) {
    %c0_i32 = arith.constant 0 : i32
    %c0_i32_0 = arith.constant 0 : i32
    %c0_i32_1 = arith.constant 0 : i32
    return %arg0, %c0_i32, %c0_i32_0 : i32, i32, i32
  }
}

module attributes {stable_mosaic.version = 11 : i64} {
  func.func @_gemm_bn_relu_kernel(%arg0: i32, %arg1: memref<1x144x8xbf16, #tpu.memory_space<vmem>>, %arg2: memref<2x8x128xbf16, #tpu.memory_space<vmem>>, %arg3: memref<1x128xf32, #tpu.memory_space<vmem>>, %arg4: memref<1x128xf32, #tpu.memory_space<vmem>>, %arg5: memref<1x128x128xf32, #tpu.memory_space<vmem>>) attributes {dimension_semantics = [#tpu.dimension_semantics<parallel>], iteration_bounds = array<i64: 4>, scalar_prefetch = 0 : i64, scratch_operands = 0 : i64, tpu.core_type = #tpu.core_type<tc>, window_params = [{transform_indices = @transform_0, window_bounds = array<i64: 1, 144, 8>}, {pipeline_mode = #tpu.pipeline_mode<synchronous>, transform_indices = @transform_1, window_bounds = array<i64: 2, 8, 128>}, {pipeline_mode = #tpu.pipeline_mode<synchronous>, transform_indices = @transform_2, window_bounds = array<i64: 1, 128>}, {pipeline_mode = #tpu.pipeline_mode<synchronous>, transform_indices = @transform_3, window_bounds = array<i64: 1, 128>}, {transform_indices = @transform_4, window_bounds = array<i64: 1, 128, 128>}]} {
    %c0 = arith.constant 0 : index
    %c0_0 = arith.constant 0 : index
    %c0_1 = arith.constant 0 : index
    %0 = vector.load %arg1[%c0, %c0_0, %c0_1] : memref<1x144x8xbf16, #tpu.memory_space<vmem>>, vector<1x128x8xbf16>
    %1 = vector.shape_cast %0 : vector<1x128x8xbf16> to vector<128x8xbf16>
    %c0_2 = arith.constant 0 : index
    %c16 = arith.constant 16 : index
    %c0_3 = arith.constant 0 : index
    %2 = vector.load %arg1[%c0_2, %c16, %c0_3] : memref<1x144x8xbf16, #tpu.memory_space<vmem>>, vector<1x128x8xbf16>
    %3 = vector.shape_cast %2 : vector<1x128x8xbf16> to vector<128x8xbf16>
    %c0_4 = arith.constant 0 : index
    %c0_5 = arith.constant 0 : index
    %c0_6 = arith.constant 0 : index
    %4 = vector.load %arg2[%c0_4, %c0_5, %c0_6] : memref<2x8x128xbf16, #tpu.memory_space<vmem>>, vector<1x8x128xbf16>
    %5 = vector.shape_cast %4 : vector<1x8x128xbf16> to vector<8x128xbf16>
    %cst = arith.constant dense<0.000000e+00> : vector<128x128xf32>
    %6 = tpu.matmul %1, %5, %cst {dimension_numbers = #tpu.dot_dimension_numbers<[1], [0], [0], [1], [0, 0, 1, 1], [], []>} : vector<128x8xbf16>, vector<8x128xbf16>, vector<128x128xf32> -> vector<128x128xf32>
    %c1 = arith.constant 1 : index
    %c0_7 = arith.constant 0 : index
    %c0_8 = arith.constant 0 : index
    %7 = vector.load %arg2[%c1, %c0_7, %c0_8] : memref<2x8x128xbf16, #tpu.memory_space<vmem>>, vector<1x8x128xbf16>
    %8 = vector.shape_cast %7 : vector<1x8x128xbf16> to vector<8x128xbf16>
    %cst_9 = arith.constant dense<0.000000e+00> : vector<128x128xf32>
    %9 = tpu.matmul %3, %8, %cst_9 {dimension_numbers = #tpu.dot_dimension_numbers<[1], [0], [0], [1], [0, 0, 1, 1], [], []>} : vector<128x8xbf16>, vector<8x128xbf16>, vector<128x128xf32> -> vector<128x128xf32>
    %10 = arith.addf %6, %9 : vector<128x128xf32>
    %c0_10 = arith.constant 0 : index
    %c0_11 = arith.constant 0 : index
    %11 = vector.load %arg3[%c0_10, %c0_11] : memref<1x128xf32, #tpu.memory_space<vmem>>, vector<1x128xf32>
    %12 = vector.broadcast %11 : vector<1x128xf32> to vector<128x128xf32>
    %13 = arith.mulf %10, %12 : vector<128x128xf32>
    %c0_12 = arith.constant 0 : index
    %c0_13 = arith.constant 0 : index
    %14 = vector.load %arg4[%c0_12, %c0_13] : memref<1x128xf32, #tpu.memory_space<vmem>>, vector<1x128xf32>
    %15 = vector.broadcast %14 : vector<1x128xf32> to vector<128x128xf32>
    %16 = arith.addf %13, %15 : vector<128x128xf32>
    %cst_14 = arith.constant 0.000000e+00 : f32
    %17 = vector.broadcast %cst_14 : f32 to vector<128x128xf32>
    %18 = arith.maximumf %16, %17 : vector<128x128xf32>
    %c0_15 = arith.constant 0 : index
    %c0_16 = arith.constant 0 : index
    %c0_17 = arith.constant 0 : index
    %19 = vector.load %arg5[%c0_15, %c0_16, %c0_17] : memref<1x128x128xf32, #tpu.memory_space<vmem>>, vector<1x128x128xf32>
    %20 = vector.shape_cast %19 : vector<1x128x128xf32> to vector<128x128xf32>
    %21 = vector.shape_cast %18 : vector<128x128xf32> to vector<1x128x128xf32>
    tpu.vector_store %arg5[%c0_15, %c0_16, %c0_17], %21 {strides = array<i32>} : memref<1x128x128xf32, #tpu.memory_space<vmem>>, vector<1x128x128xf32>,
    return
  }
  func.func @transform_0(%arg0: i32) -> (i32, i32, i32) {
    %c0_i32 = arith.constant 0 : i32
    %c0_i32_0 = arith.constant 0 : i32
    %c0_i32_1 = arith.constant 0 : i32
    return %arg0, %c0_i32, %c0_i32_0 : i32, i32, i32
  }
  func.func @transform_1(%arg0: i32) -> (i32, i32, i32) {
    %c0_i32 = arith.constant 0 : i32
    %c0_i32_0 = arith.constant 0 : i32
    %c0_i32_1 = arith.constant 0 : i32
    %c0_i32_2 = arith.constant 0 : i32
    return %c0_i32, %c0_i32_0, %c0_i32_1 : i32, i32, i32
  }
  func.func @transform_2(%arg0: i32) -> (i32, i32) {
    %c0_i32 = arith.constant 0 : i32
    %c0_i32_0 = arith.constant 0 : i32
    %c0_i32_1 = arith.constant 0 : i32
    return %c0_i32, %c0_i32_0 : i32, i32
  }
  func.func @transform_3(%arg0: i32) -> (i32, i32) {
    %c0_i32 = arith.constant 0 : i32
    %c0_i32_0 = arith.constant 0 : i32
    %c0_i32_1 = arith.constant 0 : i32
    return %c0_i32, %c0_i32_0 : i32, i32
  }
  func.func @transform_4(%arg0: i32) -> (i32, i32, i32) {
    %c0_i32 = arith.constant 0 : i32
    %c0_i32_0 = arith.constant 0 : i32
    %c0_i32_1 = arith.constant 0 : i32
    return %arg0, %c0_i32, %c0_i32_0 : i32, i32, i32
  }
}

</mosaic_0001>

<bundles_post_ra>
// kernel: tile.18
= control target key start
LH: loop header
LB: loop body
LE: loop exit
PB: predicated region body
PF: predicated region fallthrough
CT: control target
= control target key end

     0   :  { %s22_s0 = inlined_call_operand.vmem [shape: f32[32], index: 0, kind: input, shape index: {}]   ;;  %s23_s1 = inlined_call_operand.vmem [shape: f32[4,32], index: 1, kind: output, shape index: {}]  }
   0x1   :  { %v4_v0 = vld [vmem:[%s22_s0] ss:$0 sm:$0xff] }
   0x2   :  { %5 = vst [vmem:[%s23_s1] sm:$0xf] %v4_v0 }

// kernel: tile.19
= control target key start
LH: loop header
LB: loop body
LE: loop exit
PB: predicated region body
PF: predicated region fallthrough
CT: control target
= control target key end

     0   :  { %vm7_vm0 = vcmask 261120   ;;  %s37_s8 = smov 32   ;;  %s38_s9 = smov 64   ;;  %vm13_vm1 = vcmask 1048320   ;;  %vm19_vm2 = vcmask 785920   ;;  %vm25_vm3 = vcmask 523520   ;;  %s55_s0 = inlined_call_operand.vmem [shape: f32[4,32], index: 0, kind: input, shape index: {}]   ;;  %s56_s1 = inlined_call_operand.vmem [shape: f32[1,128], index: 1, kind: output, shape index: {}]  }
   0x1   :  { %v4_v0 = vld [vmem:[%s55_s0] sm:$0xf]  ;;  %s36_s0 = smov 96  }
   0x2   :  { %5 = vst [vmem:[#allocation1] sm:$0xf] %v4_v0 }
   0x9   :  { %v10_v1 = vld [vmem:[#allocation1 + $0x3] sm:$0x1]   ;;  %v22_v2 = vld [vmem:[#allocation1 + $0x1] sm:$0x1]   ;;  %v6_v3 = vld [vmem:[#allocation1] sm:$0x1]  }
   0xa   :  { %11 = vrot.lane.b32.xlu0 %v10_v1, %s36_s0  ;;  %23 = vrot.lane.b32.xlu1 %v22_v2, %s37_s8  ;;  %v16_v4 = vld [vmem:[#allocation1 + $0x2] sm:$0x1]   ;;  %8 = vst.msk [vmem:[#allocation0] sm:$0x1] %vm7_vm0, %v6_v3  }
   0xe   :  { %17 = vrot.lane.b32.xlu0 %v16_v4, %s38_s9 }
  0x7c   :  { %v12_v5 = vpop.permute.xlu0 %11   ;;  %v24_v6 = vpop.permute.xlu1 %23  }
  0x7d   :  { %14 = vst.msk [vmem:[#allocation0] sm:$0x1] %vm13_vm1, %v12_v5  }
  0x80   :  { %v18_v7 = vpop.permute.xlu0 %17  }
  0x81   :  { %20 = vst.msk [vmem:[#allocation0] sm:$0x1] %vm19_vm2, %v18_v7  }
  0x82   :  { %26 = vst.msk [vmem:[#allocation0] sm:$0x1] %vm25_vm3, %v24_v6  }
  0x89   :  { %v30_v8 = vld [vmem:[#allocation0] sm:$0x1] }
  0x8a   :  { %32 = vst [vmem:[%s56_s1] sm:$0x1] %v30_v8 }

// kernel: upconv_block.2
= control target key start
LH: loop header
LB: loop body
LE: loop exit
PB: predicated region body
PF: predicated region fallthrough
CT: control target
= control target key end

     0   :  { %s699_s9 = smov 0   ;;  %s742_s0 = inlined_call_operand.vmem [shape: bf16[4,144,8], index: 0, kind: input, shape index: {}]   ;;  %s743_s1 = inlined_call_operand.vmem [shape: bf16[2,8,128], index: 1, kind: input, shape index: {}]   ;;  %s744_s2 = inlined_call_operand.vmem [shape: f32[4,8,128], index: 2, kind: output, shape index: {}]  }
   0x1 LB: > { %s551_s10 = sadd.s32 4294967295, %s682_s9   ;;  %p555_p0 = scmp.ge.s32.totalorder %s682_s9, 1  ;;  %s682_s9 = sphi %s699_s9, %s12_s9  }
   0x2   : > { %p112_p1 = scmp.lt.s32.totalorder %s682_s9, 5 }
   0x4   : > { %p113_p2 = pnand %p555_p0, %p112_p1 }
   0x5   : > { %v558_v0 = vld [vmem:[%s743_s1 + $0x4] sm:$0xf] (!%p113_p2)  ;;  %vm229_vm0 = vcmask (!%p113_p2), 1043456   ;;  %v161_v1 = vld [vmem:[%s743_s1] sm:$0xf] (!%p113_p2)  ;;  %p133_p3 = scmp.lt.s32.totalorder (!%p113_p2), %s551_s10, 3 }
   0x6   : > { %116 = sbr.rel (%p113_p2) target bundleno = 281 (0x119), region = 28  ;;  %656 = vmatprep.subr.msk.bf16.mxu1 (!%p113_p2), %vm229_vm0, %v558_v0  ;;  %657 = vmatprep.subr.msk.bf16.mxu0 (!%p113_p2), %vm229_vm0, %v161_v1  ;;  %v231_v2 = vsel (!%p113_p2), %vm229_vm0, %v558_v0, 0  ;;  %v339_v3 = vsel (!%p113_p2), %vm229_vm0, %v161_v1, 0  ;;  %vm204_vm1 = vcmask (!%p113_p2), 64512  }
   0x7   : > { %605 = vmatpush3.bf16.msra.mxu1 (!%p113_p2), %v231_v2  ;;  %623 = vmatpush3.bf16.msra.mxu0 (!%p113_p2), %v339_v3 }
   0xd   : > { %s746_s10 = smov (!%p133_p3, %s551_s10), 3 }
   0xe   : > { %s658_s15 = smul.u32 72, %s746_s10  ;;  %s557_s19 = sshll.u32 %s746_s10, 3 }
   0xf   : > { %s141_s22 = scalar_lea.vmem %s744_s2, %s557_s19 }
  0x10   : > { %s137_s18 = scalar_lea.vmem %s742_s0, %s658_s15 }
  0x11   : > { %v667_v4 = vld [vmem:[%s137_s18 + $0x8] sm:$0xff]   ;;  %v668_v5 = vld [vmem:[%s137_s18] sm:$0xff]   ;;  %v669_v6 = vld [vmem:[%s137_s18 + $0x10] sm:$0xff]  }
  0x12   : > { %606 = vmatprep.mubr.msk.bf16.mxu1 %vm204_vm1, %v667_v4  ;;  %624 = vmatprep.mubr.msk.bf16.mxu0 %vm204_vm1, %v668_v5  ;;  %v670_v7 = vld [vmem:[%s137_s18 + $0x18] sm:$0xff]   ;;  %v671_v8 = vld [vmem:[%s137_s18 + $0x20] sm:$0xff]   ;;  %v672_v9 = vld [vmem:[%s137_s18 + $0x28] sm:$0xff]  }
  0x13   : > { %607 = vmatmul.mubr.msk.bf16.vlgmr.msra.gmra.mrb[0].mxu1 %vm204_vm1, %v669_v6  ;;  %625 = vmatmul.mubr.msk.bf16.vlgmr.msra.gmra.mrb[0].mxu0 %vm204_vm1, %v667_v4  ;;  %v673_v10 = vld [vmem:[%s137_s18 + $0x30] sm:$0xff]   ;;  %v674_v11 = vld [vmem:[%s137_s18 + $0x38] sm:$0xff]   ;;  %v675_v12 = vld [vmem:[%s137_s18 + $0x40] sm:$0xff]  }
  0x14   : > { %610 = vmatprep.mubr.msk.bf16.mxu1 %vm204_vm1, %v670_v7  ;;  %628 = vmatprep.mubr.msk.bf16.mxu0 %vm204_vm1, %v669_v6 }
  0x1b   : > { %611 = vmatmul.mubr.msk.bf16.gmra.mrb[4].mxu1 %vm204_vm1, %v671_v8  ;;  %629 = vmatmul.mubr.msk.bf16.gmra.mrb[4].mxu0 %vm204_vm1, %v670_v7 }
  0x1c   : > { %614 = vmatprep.mubr.msk.bf16.mxu1 %vm204_vm1, %v672_v9  ;;  %632 = vmatprep.mubr.msk.bf16.mxu0 %vm204_vm1, %v671_v8 }
  0x23   : > { %615 = vmatmul.mubr.msk.bf16.gmra.mrb[8].mxu1 %vm204_vm1, %v673_v10  ;;  %633 = vmatmul.mubr.msk.bf16.gmra.mrb[8].mxu0 %vm204_vm1, %v672_v9 }
  0x24   : > { %618 = vmatprep.mubr.msk.bf16.mxu1 %vm204_vm1, %v674_v11  ;;  %636 = vmatprep.mubr.msk.bf16.mxu0 %vm204_vm1, %v673_v10 }
  0x2b   : > { %619 = vmatmul.mubr.msk.bf16.gmra.mrb[12].mxu1 %vm204_vm1, %v675_v12  ;;  %637 = vmatmul.mubr.msk.bf16.gmra.mrb[12].mxu0 %vm204_vm1, %v674_v11 }
  0xe6   : > { %v608_v13 = vpop.f32.mrb[0].mxu1  ;;  %v626_v14 = vpop.f32.mrb[0].mxu0 }
  0xe7   : > { %v384_v15 = vadd.f32 %v626_v14, %v608_v13  ;;  %v267_v16 = vpop.f32.mrb[1].mxu1  ;;  %v375_v17 = vpop.f32.mrb[1].mxu0 }
  0xe8   : > { %v376_v18 = vadd.f32 %v375_v17, %v267_v16  ;;  %v609_v19 = vpop.f32.mrb[2].mxu1  ;;  %v627_v20 = vpop.f32.mrb[2].mxu0 }
  0xe9   : > { %v387_v21 = vadd.f32 %v627_v20, %v609_v19  ;;  %v270_v22 = vpop.f32.mrb[3].mxu1  ;;  %v378_v23 = vpop.f32.mrb[3].mxu0  ;;  %v462_v28 = vmul.f32 %v384_v15, %v384_v15 }
  0xea   : > { %v379_v24 = vadd.f32 %v378_v23, %v270_v22  ;;  %v460_v25 = vmul.f32 %v376_v18, %v376_v18 }
  0xeb   : > { %v463_v36 = vmul.f32 %v387_v21, %v387_v21 }
  0xec   : > { %v438_v26 = vadd.f32 %v379_v24, %v376_v18  ;;  %v461_v27 = vmul.f32 %v379_v24, %v379_v24 }
  0xee   : > { %v439_v29 = vadd.f32 %v438_v26, %v384_v15  ;;  %v476_v30 = vadd.f32 %v461_v27, %v460_v25  ;;  %v612_v31 = vpop.f32.mrb[4].mxu1  ;;  %v630_v32 = vpop.f32.mrb[4].mxu0 }
  0xef   : > { %v400_v33 = vadd.f32 %v630_v32, %v612_v31  ;;  %v283_v34 = vpop.f32.mrb[5].mxu1  ;;  %v391_v35 = vpop.f32.mrb[5].mxu0 }
  0xf0   : > { %v477_v37 = vadd.f32 %v476_v30, %v462_v28  ;;  %v392_v38 = vadd.f32 %v391_v35, %v283_v34  ;;  %v440_v39 = vadd.f32 %v439_v29, %v387_v21  ;;  %v613_v40 = vpop.f32.mrb[6].mxu1  ;;  %v631_v41 = vpop.f32.mrb[6].mxu0 }
  0xf1   : > { %v403_v42 = vadd.f32 %v631_v41, %v613_v40  ;;  %v286_v43 = vpop.f32.mrb[7].mxu1  ;;  %v394_v44 = vpop.f32.mrb[7].mxu0  ;;  %v466_v52 = vmul.f32 %v400_v33, %v400_v33 }
  0xf2   : > { %v441_v45 = vadd.f32 %v440_v39, %v392_v38  ;;  %v464_v46 = vmul.f32 %v392_v38, %v392_v38  ;;  %v478_v47 = vadd.f32 %v477_v37, %v463_v36  ;;  %v395_v48 = vadd.f32 %v394_v44, %v286_v43 }
  0xf3   : > { %v467_v60 = vmul.f32 %v403_v42, %v403_v42 }
  0xf4   : > { %v479_v49 = vadd.f32 %v478_v47, %v464_v46  ;;  %v442_v50 = vadd.f32 %v441_v45, %v395_v48  ;;  %v465_v51 = vmul.f32 %v395_v48, %v395_v48 }
  0xf6   : > { %v443_v53 = vadd.f32 %v442_v50, %v400_v33  ;;  %v480_v54 = vadd.f32 %v479_v49, %v465_v51  ;;  %v616_v55 = vpop.f32.mrb[8].mxu1  ;;  %v634_v56 = vpop.f32.mrb[8].mxu0 }
  0xf7   : > { %v416_v57 = vadd.f32 %v634_v56, %v616_v55  ;;  %v299_v58 = vpop.f32.mrb[9].mxu1  ;;  %v407_v59 = vpop.f32.mrb[9].mxu0 }
  0xf8   : > { %v481_v61 = vadd.f32 %v480_v54, %v466_v52  ;;  %v408_v62 = vadd.f32 %v407_v59, %v299_v58  ;;  %v444_v63 = vadd.f32 %v443_v53, %v403_v42  ;;  %v617_v0 = vpop.f32.mrb[10].mxu1  ;;  %v635_v1 = vpop.f32.mrb[10].mxu0 }
  0xf9   : > { %v419_v2 = vadd.f32 %v635_v1, %v617_v0  ;;  %v302_v3 = vpop.f32.mrb[11].mxu1  ;;  %v410_v4 = vpop.f32.mrb[11].mxu0  ;;  %v470_v12 = vmul.f32 %v416_v57, %v416_v57 }
  0xfa   : > { %v445_v5 = vadd.f32 %v444_v63, %v408_v62  ;;  %v468_v6 = vmul.f32 %v408_v62, %v408_v62  ;;  %v482_v7 = vadd.f32 %v481_v61, %v467_v60  ;;  %v411_v8 = vadd.f32 %v410_v4, %v302_v3 }
  0xfb   : > { %v471_v20 = vmul.f32 %v419_v2, %v419_v2 }
  0xfc   : > { %v483_v9 = vadd.f32 %v482_v7, %v468_v6  ;;  %v446_v10 = vadd.f32 %v445_v5, %v411_v8  ;;  %v469_v11 = vmul.f32 %v411_v8, %v411_v8 }
  0xfe   : > { %v447_v13 = vadd.f32 %v446_v10, %v416_v57  ;;  %v484_v14 = vadd.f32 %v483_v9, %v469_v11  ;;  %v620_v15 = vpop.f32.mrb[12].mxu1  ;;  %v638_v16 = vpop.f32.mrb[12].mxu0 }
  0xff   : > { %v432_v17 = vadd.f32 %v638_v16, %v620_v15  ;;  %v315_v18 = vpop.f32.mrb[13].mxu1  ;;  %v423_v19 = vpop.f32.mrb[13].mxu0 }
 0x100   : > { %v485_v21 = vadd.f32 %v484_v14, %v470_v12  ;;  %v424_v22 = vadd.f32 %v423_v19, %v315_v18  ;;  %v448_v23 = vadd.f32 %v447_v13, %v419_v2  ;;  %v621_v24 = vpop.f32.mrb[14].mxu1  ;;  %v639_v25 = vpop.f32.mrb[14].mxu0 }
 0x101   : > { %v435_v26 = vadd.f32 %v639_v25, %v621_v24  ;;  %v318_v27 = vpop.f32.mrb[15].mxu1  ;;  %v426_v28 = vpop.f32.mrb[15].mxu0  ;;  %v474_v36 = vmul.f32 %v432_v17, %v432_v17 }
 0x102   : > { %v449_v29 = vadd.f32 %v448_v23, %v424_v22  ;;  %v472_v30 = vmul.f32 %v424_v22, %v424_v22  ;;  %v486_v31 = vadd.f32 %v485_v21, %v471_v20  ;;  %v427_v32 = vadd.f32 %v426_v28, %v318_v27 }
 0x103   : > { %v475_v39 = vmul.f32 %v435_v26, %v435_v26 }
 0x104   : > { %v487_v33 = vadd.f32 %v486_v31, %v472_v30  ;;  %v450_v34 = vadd.f32 %v449_v29, %v427_v32  ;;  %v473_v35 = vmul.f32 %v427_v32, %v427_v32 }
 0x106   : > { %v451_v37 = vadd.f32 %v450_v34, %v432_v17  ;;  %v488_v38 = vadd.f32 %v487_v33, %v473_v35 }
 0x108   : > { %v452_v40 = vadd.f32 %v451_v37, %v435_v26  ;;  %v489_v41 = vadd.f32 %v488_v38, %v474_v36 }
 0x10a   : > { %v453_v42 = vrot.slane %v452_v40, 4  ;;  %v490_v43 = vadd.f32 %v489_v41, %v475_v39 }
 0x10c   : > { %v454_v44 = vadd.f32 %v453_v42, %v452_v40  ;;  %v491_v45 = vrot.slane %v490_v43, 4 }
 0x10e   : > { %v455_v46 = vrot.slane %v454_v44, 2  ;;  %v492_v47 = vadd.f32 %v491_v45, %v490_v43 }
 0x110   : > { %v456_v48 = vadd.f32 %v455_v46, %v454_v44  ;;  %v493_v49 = vrot.slane %v492_v47, 2 }
 0x112   : > { %v457_v50 = vrot.slane %v456_v48, 1  ;;  %v494_v51 = vadd.f32 %v493_v49, %v492_v47 }
 0x114   : > { %v458_v52 = vadd.f32 %v457_v50, %v456_v48  ;;  %v495_v53 = vrot.slane %v494_v51, 1 }
 0x116   : > { %459 = vst [vmem:[%s141_s22] sm:$0x1] %v458_v52  ;;  %v496_v54 = vadd.f32 %v495_v53, %v494_v51 }
 0x118   : > { %497 = vst [vmem:[%s141_s22 + $0x1] sm:$0x1] %v496_v54 }
 0x119 PF: > { %s12_s9 = sadd.s32 1, %s682_s9  }
 0x11a   : > { %p9_p4 = scmp.ge.s32.totalorder %s12_s9, 6  }
 0x11c   :  { %11 = sbr.rel (!%p9_p4) target bundleno = 1 (0x1), region = 59 }

// kernel: upconv_block.3
= control target key start
LH: loop header
LB: loop body
LE: loop exit
PB: predicated region body
PF: predicated region fallthrough
CT: control target
= control target key end

     0   :  { %s789_s15 = smov 0   ;;  %s892_s0 = inlined_call_operand.vmem [shape: bf16[4,144,8], index: 0, kind: input, shape index: {}]   ;;  %s893_s1 = inlined_call_operand.vmem [shape: bf16[2,8,128], index: 1, kind: input, shape index: {}]   ;;  %s894_s2 = inlined_call_operand.vmem [shape: f32[1,128], index: 2, kind: input, shape index: {}]   ;;  %s895_s3 = inlined_call_operand.vmem [shape: f32[1,128], index: 3, kind: input, shape index: {}]   ;;  %s896_s4 = inlined_call_operand.vmem [shape: f32[4,128,128], index: 4, kind: output, shape index: {}]  }
   0x1 LB: > { %s627_s16 = sadd.s32 4294967295, %s762_s15   ;;  %p631_p0 = scmp.ge.s32.totalorder %s762_s15, 1  ;;  %s762_s15 = sphi %s789_s15, %s14_s15  }
   0x2   : > { %p162_p1 = scmp.lt.s32.totalorder %s762_s15, 5 }
   0x4   : > { %p163_p2 = pnand %p631_p0, %p162_p1 }
   0x5   : > { %v635_v0 = vld [vmem:[%s893_s1 + $0x4] sm:$0xf] (!%p163_p2)  ;;  %vm285_vm0 = vcmask (!%p163_p2), 1043456   ;;  %v217_v1 = vld [vmem:[%s893_s1] sm:$0xf] (!%p163_p2)  ;;  %p188_p3 = scmp.lt.s32.totalorder (!%p163_p2), %s627_s16, 3 }
   0x6   : > { %166 = sbr.rel (%p163_p2) target bundleno = 267 (0x10b), region = 36  ;;  %736 = vmatprep.subr.msk.bf16.mxu1 (!%p163_p2), %vm285_vm0, %v635_v0  ;;  %737 = vmatprep.subr.msk.bf16.mxu0 (!%p163_p2), %vm285_vm0, %v217_v1  ;;  %v287_v2 = vsel (!%p163_p2), %vm285_vm0, %v635_v0, 0  ;;  %v395_v3 = vsel (!%p163_p2), %vm285_vm0, %v217_v1, 0  ;;  %vm260_vm1 = vcmask (!%p163_p2), 64512   ;;  %v828_v15 = vld [vmem:[%s894_s2] ss:$0 sm:$0xff] (!%p163_p2) }
   0x7   : > { %685 = vmatpush3.bf16.msra.mxu1 (!%p163_p2), %v287_v2  ;;  %703 = vmatpush3.bf16.msra.mxu0 (!%p163_p2), %v395_v3  ;;  %v833_v19 = vld [vmem:[%s895_s3] ss:$0 sm:$0xff] (!%p163_p2) }
   0xd   : > { %s898_s16 = smov (!%p188_p3, %s627_s16), 3 }
   0xe   : > { %s738_s21 = smul.u32 72, %s898_s16  ;;  %s665_s29 = sshll.u32 %s898_s16, 7 }
   0xf   : > { %s843_s6 = scalar_lea.vmem %s896_s4, %s665_s29 }
  0x10   : > { %s192_s24 = scalar_lea.vmem %s892_s0, %s738_s21 }
  0x11   : > { %v747_v4 = vld [vmem:[%s192_s24 + $0x8] sm:$0xff]   ;;  %v748_v5 = vld [vmem:[%s192_s24] sm:$0xff]   ;;  %v749_v6 = vld [vmem:[%s192_s24 + $0x10] sm:$0xff]  }
  0x12   : > { %686 = vmatprep.mubr.msk.bf16.mxu1 %vm260_vm1, %v747_v4  ;;  %704 = vmatprep.mubr.msk.bf16.mxu0 %vm260_vm1, %v748_v5  ;;  %v750_v7 = vld [vmem:[%s192_s24 + $0x18] sm:$0xff]   ;;  %v751_v8 = vld [vmem:[%s192_s24 + $0x20] sm:$0xff]   ;;  %v752_v9 = vld [vmem:[%s192_s24 + $0x28] sm:$0xff]  }
  0x13   : > { %687 = vmatmul.mubr.msk.bf16.vlgmr.msra.gmra.mrb[0].mxu1 %vm260_vm1, %v749_v6  ;;  %705 = vmatmul.mubr.msk.bf16.vlgmr.msra.gmra.mrb[0].mxu0 %vm260_vm1, %v747_v4  ;;  %v753_v10 = vld [vmem:[%s192_s24 + $0x30] sm:$0xff]   ;;  %v754_v11 = vld [vmem:[%s192_s24 + $0x38] sm:$0xff]   ;;  %v755_v12 = vld [vmem:[%s192_s24 + $0x40] sm:$0xff]  }
  0x14   : > { %690 = vmatprep.mubr.msk.bf16.mxu1 %vm260_vm1, %v750_v7  ;;  %708 = vmatprep.mubr.msk.bf16.mxu0 %vm260_vm1, %v749_v6 }
  0x1b   : > { %691 = vmatmul.mubr.msk.bf16.gmra.mrb[4].mxu1 %vm260_vm1, %v751_v8  ;;  %709 = vmatmul.mubr.msk.bf16.gmra.mrb[4].mxu0 %vm260_vm1, %v750_v7 }
  0x1c   : > { %694 = vmatprep.mubr.msk.bf16.mxu1 %vm260_vm1, %v752_v9  ;;  %712 = vmatprep.mubr.msk.bf16.mxu0 %vm260_vm1, %v751_v8 }
  0x23   : > { %695 = vmatmul.mubr.msk.bf16.gmra.mrb[8].mxu1 %vm260_vm1, %v753_v10  ;;  %713 = vmatmul.mubr.msk.bf16.gmra.mrb[8].mxu0 %vm260_vm1, %v752_v9 }
  0x24   : > { %698 = vmatprep.mubr.msk.bf16.mxu1 %vm260_vm1, %v754_v11  ;;  %716 = vmatprep.mubr.msk.bf16.mxu0 %vm260_vm1, %v753_v10 }
  0x2b   : > { %699 = vmatmul.mubr.msk.bf16.gmra.mrb[12].mxu1 %vm260_vm1, %v755_v12  ;;  %717 = vmatmul.mubr.msk.bf16.gmra.mrb[12].mxu0 %vm260_vm1, %v754_v11 }
  0xe6   : > { %v688_v13 = vpop.f32.mrb[0].mxu1  ;;  %v706_v14 = vpop.f32.mrb[0].mxu0 }
  0xe7   : > { %v440_v16 = vadd.f32 %v706_v14, %v688_v13  ;;  %v323_v17 = vpop.f32.mrb[1].mxu1  ;;  %v431_v18 = vpop.f32.mrb[1].mxu0 }
  0xe8   : > { %v432_v20 = vadd.f32 %v431_v18, %v323_v17  ;;  %v689_v21 = vpop.f32.mrb[2].mxu1  ;;  %v707_v22 = vpop.f32.mrb[2].mxu0 }
  0xe9   : > { %v503_v23 = vmul.f32 %v828_v15, %v440_v16  ;;  %v443_v24 = vadd.f32 %v707_v22, %v689_v21  ;;  %v326_v25 = vpop.f32.mrb[3].mxu1  ;;  %v434_v26 = vpop.f32.mrb[3].mxu0 }
  0xea   : > { %v501_v27 = vmul.f32 %v828_v15, %v432_v20  ;;  %v435_v28 = vadd.f32 %v434_v26, %v326_v25 }
  0xeb   : > { %v526_v29 = vadd.f32 %v833_v19, %v503_v23  ;;  %v504_v30 = vmul.f32 %v828_v15, %v443_v24 }
  0xec   : > { %v524_v31 = vadd.f32 %v833_v19, %v501_v27  ;;  %v502_v32 = vmul.f32 %v828_v15, %v435_v28 }
  0xed   : > { %v542_v33 = vmax.f32 %v526_v29, 0.0  ;;  %v527_v34 = vadd.f32 %v833_v19, %v504_v30 }
  0xee   : > { %v540_v35 = vmax.f32 %v524_v31, 0.0  ;;  %v525_v36 = vadd.f32 %v833_v19, %v502_v32  ;;  %v692_v37 = vpop.f32.mrb[4].mxu1  ;;  %v710_v38 = vpop.f32.mrb[4].mxu0 }
  0xef   : > { %558 = vst [vmem:[%s843_s6 + $0x10] sm:$0xff] %v542_v33  ;;  %v543_v39 = vmax.f32 %v527_v34, 0.0  ;;  %v456_v40 = vadd.f32 %v710_v38, %v692_v37  ;;  %v339_v41 = vpop.f32.mrb[5].mxu1  ;;  %v447_v42 = vpop.f32.mrb[5].mxu0 }
  0xf0   : > { %556 = vst [vmem:[%s843_s6] sm:$0xff] %v540_v35  ;;  %v541_v43 = vmax.f32 %v525_v36, 0.0  ;;  %v448_v44 = vadd.f32 %v447_v42, %v339_v41  ;;  %v693_v45 = vpop.f32.mrb[6].mxu1  ;;  %v711_v46 = vpop.f32.mrb[6].mxu0 }
  0xf1   : > { %559 = vst [vmem:[%s843_s6 + $0x18] sm:$0xff] %v543_v39  ;;  %v507_v47 = vmul.f32 %v828_v15, %v456_v40  ;;  %v459_v48 = vadd.f32 %v711_v46, %v693_v45  ;;  %v342_v49 = vpop.f32.mrb[7].mxu1  ;;  %v450_v50 = vpop.f32.mrb[7].mxu0 }
  0xf2   : > { %557 = vst [vmem:[%s843_s6 + $0x8] sm:$0xff] %v541_v43  ;;  %v505_v51 = vmul.f32 %v828_v15, %v448_v44  ;;  %v451_v52 = vadd.f32 %v450_v50, %v342_v49 }
  0xf3   : > { %v530_v53 = vadd.f32 %v833_v19, %v507_v47  ;;  %v508_v54 = vmul.f32 %v828_v15, %v459_v48 }
  0xf4   : > { %v528_v55 = vadd.f32 %v833_v19, %v505_v51  ;;  %v506_v56 = vmul.f32 %v828_v15, %v451_v52 }
  0xf5   : > { %v546_v57 = vmax.f32 %v530_v53, 0.0  ;;  %v531_v58 = vadd.f32 %v833_v19, %v508_v54 }
  0xf6   : > { %v544_v59 = vmax.f32 %v528_v55, 0.0  ;;  %v529_v60 = vadd.f32 %v833_v19, %v506_v56  ;;  %v696_v61 = vpop.f32.mrb[8].mxu1  ;;  %v714_v62 = vpop.f32.mrb[8].mxu0 }
  0xf7   : > { %562 = vst [vmem:[%s843_s6 + $0x30] sm:$0xff] %v546_v57  ;;  %v547_v63 = vmax.f32 %v531_v58, 0.0  ;;  %v472_v0 = vadd.f32 %v714_v62, %v696_v61  ;;  %v355_v1 = vpop.f32.mrb[9].mxu1  ;;  %v463_v2 = vpop.f32.mrb[9].mxu0 }
  0xf8   : > { %560 = vst [vmem:[%s843_s6 + $0x20] sm:$0xff] %v544_v59  ;;  %v545_v3 = vmax.f32 %v529_v60, 0.0  ;;  %v464_v4 = vadd.f32 %v463_v2, %v355_v1  ;;  %v697_v5 = vpop.f32.mrb[10].mxu1  ;;  %v715_v6 = vpop.f32.mrb[10].mxu0 }
  0xf9   : > { %563 = vst [vmem:[%s843_s6 + $0x38] sm:$0xff] %v547_v63  ;;  %v511_v7 = vmul.f32 %v828_v15, %v472_v0  ;;  %v475_v8 = vadd.f32 %v715_v6, %v697_v5  ;;  %v358_v9 = vpop.f32.mrb[11].mxu1  ;;  %v466_v10 = vpop.f32.mrb[11].mxu0 }
  0xfa   : > { %561 = vst [vmem:[%s843_s6 + $0x28] sm:$0xff] %v545_v3  ;;  %v509_v11 = vmul.f32 %v828_v15, %v464_v4  ;;  %v467_v12 = vadd.f32 %v466_v10, %v358_v9 }
  0xfb   : > { %v534_v13 = vadd.f32 %v833_v19, %v511_v7  ;;  %v512_v14 = vmul.f32 %v828_v15, %v475_v8 }
  0xfc   : > { %v532_v16 = vadd.f32 %v833_v19, %v509_v11  ;;  %v510_v17 = vmul.f32 %v828_v15, %v467_v12 }
  0xfd   : > { %v550_v18 = vmax.f32 %v534_v13, 0.0  ;;  %v535_v20 = vadd.f32 %v833_v19, %v512_v14 }
  0xfe   : > { %v548_v21 = vmax.f32 %v532_v16, 0.0  ;;  %v533_v22 = vadd.f32 %v833_v19, %v510_v17  ;;  %v700_v23 = vpop.f32.mrb[12].mxu1  ;;  %v718_v24 = vpop.f32.mrb[12].mxu0 }
  0xff   : > { %566 = vst [vmem:[%s843_s6 + $0x50] sm:$0xff] %v550_v18  ;;  %v551_v25 = vmax.f32 %v535_v20, 0.0  ;;  %v488_v26 = vadd.f32 %v718_v24, %v700_v23  ;;  %v371_v27 = vpop.f32.mrb[13].mxu1  ;;  %v479_v28 = vpop.f32.mrb[13].mxu0 }
 0x100   : > { %564 = vst [vmem:[%s843_s6 + $0x40] sm:$0xff] %v548_v21  ;;  %v549_v29 = vmax.f32 %v533_v22, 0.0  ;;  %v480_v30 = vadd.f32 %v479_v28, %v371_v27  ;;  %v701_v31 = vpop.f32.mrb[14].mxu1  ;;  %v719_v32 = vpop.f32.mrb[14].mxu0 }
 0x101   : > { %567 = vst [vmem:[%s843_s6 + $0x58] sm:$0xff] %v551_v25  ;;  %v515_v33 = vmul.f32 %v828_v15, %v488_v26  ;;  %v491_v34 = vadd.f32 %v719_v32, %v701_v31  ;;  %v374_v35 = vpop.f32.mrb[15].mxu1  ;;  %v482_v36 = vpop.f32.mrb[15].mxu0 }
 0x102   : > { %565 = vst [vmem:[%s843_s6 + $0x48] sm:$0xff] %v549_v29  ;;  %v513_v37 = vmul.f32 %v828_v15, %v480_v30  ;;  %v483_v38 = vadd.f32 %v482_v36, %v374_v35 }
 0x103   : > { %v538_v39 = vadd.f32 %v833_v19, %v515_v33  ;;  %v516_v40 = vmul.f32 %v828_v15, %v491_v34 }
 0x104   : > { %v536_v41 = vadd.f32 %v833_v19, %v513_v37  ;;  %v514_v42 = vmul.f32 %v828_v15, %v483_v38 }
 0x105   : > { %v554_v43 = vmax.f32 %v538_v39, 0.0  ;;  %v539_v44 = vadd.f32 %v833_v19, %v516_v40 }
 0x106   : > { %v552_v45 = vmax.f32 %v536_v41, 0.0  ;;  %v537_v46 = vadd.f32 %v833_v19, %v514_v42 }
 0x107   : > { %570 = vst [vmem:[%s843_s6 + $0x70] sm:$0xff] %v554_v43  ;;  %v555_v47 = vmax.f32 %v539_v44, 0.0 }
 0x108   : > { %568 = vst [vmem:[%s843_s6 + $0x60] sm:$0xff] %v552_v45  ;;  %v553_v48 = vmax.f32 %v537_v46, 0.0 }
 0x109   : > { %571 = vst [vmem:[%s843_s6 + $0x78] sm:$0xff] %v555_v47 }
 0x10a   : > { %569 = vst [vmem:[%s843_s6 + $0x68] sm:$0xff] %v553_v48 }
 0x10b PF: > { %s14_s15 = sadd.s32 1, %s762_s15  }
 0x10c   : > { %p11_p4 = scmp.ge.s32.totalorder %s14_s15, 6  }
 0x10e   :  { %13 = sbr.rel (!%p11_p4) target bundleno = 1 (0x1), region = 67 }

</bundles_post_ra>
